<compile_context>
chip_gen: v7x
topology: tpu7x:2x2x1
jax: 0.10.0
libtpu: 0.0.40
codegen_flags: <defaults>
</compile_context>

<pallas_src>
import numpy as np
import jax
import jax.numpy as jnp
from jax.experimental import pallas as pl
from jax.experimental.pallas import tpu as pltpu


def _transition_kernel(x_ref, w_ref, b_ref, p_ref, o_ref):
    # x_ref: (1, ipc*Cin, H*W)    input block, lane axis = H*W (lane-dense)
    # w_ref: (ipc*Cout, ipc*Cin)  block-diagonal 1x1-conv weight with BN folded in (grid-invariant)
    # b_ref: (ipc*Cout, 1)        folded conv+BN bias, f32 (grid-invariant)
    # p_ref: (H*W, Ho*Wo)         pooling matrix, ceil_mode clipped 1/count baked in (grid-invariant)
    # o_ref: (1, ipc*Cout, Ho*Wo) output block
    #
    # 1x1 conv (+ folded BN) on the MXU; bf16 or f32 operands, f32 accumulation.
    y = jnp.dot(w_ref[...], x_ref[0], preferred_element_type=jnp.float32)     # (ipc*Cout, H*W)
    # bias + ReLU on the VPU (f32).  Dropout2d(p=0.0) is the identity.
    y = jnp.maximum(y + b_ref[...], 0.0)
    # 2x2 ceil_mode average pool as ONE matmul; divisors are inside p_ref, single store.
    o_ref[0] = jnp.dot(y, p_ref[...], preferred_element_type=jnp.float32).astype(o_ref.dtype)


def _pool_matrix(H, W, Ho, Wo):
    """(H*W, Ho*Wo) avg-pool matrix, kernel=2 stride=2 ceil_mode=True, padding=0.

    Each column holds 1/(clipped window size) at the positions of that output pixel's window
    (PyTorch AvgPool2d semantics for padding=0)."""
    P = np.zeros((H * W, Ho * Wo), dtype=np.float32)
    for ho in range(Ho):
        hs, he = 2 * ho, min(2 * ho + 2, H)
        for wo in range(Wo):
            ws, we = 2 * wo, min(2 * wo + 2, W)
            inv = 1.0 / float((he - hs) * (we - ws))
            for h in range(hs, he):
                for w in range(ws, we):
                    P[h * W + w, ho * Wo + wo] = inv
    return P


def transition_forward(x_nchw, conv_w, conv_b, bn_gamma, bn_beta, bn_mean, bn_var,
                       *, eps=1e-5, images_per_step=1, compute_dtype=jnp.float32):
    """x_nchw: (N, Cin, H, W) -> (N, Cout, ceil(H/2), ceil(W/2)).

    images_per_step: images packed into one grid step (must divide N).
        1  -> grid=(N,) "parallel"  (keeps both v7x TensorCores busy)
        N  -> one grid step for the whole batch (minimal fixed overhead on single-TC v5e/v6e)
    compute_dtype: dtype of x / folded conv weight fed to the MXU (f32 or bf16); accumulation
        and all post-matmul elementwise math stay f32.
    """
    N, Cin, H, W = x_nchw.shape
    Cout = conv_w.shape[0]
    Ho, Wo = -(-H // 2), -(-W // 2)
    ipc = images_per_step
    assert N % ipc == 0, "images_per_step must divide the batch size"

    # Fold BatchNorm (eval mode, running stats) into the 1x1-conv weight/bias.
    scale = bn_gamma / jnp.sqrt(bn_var + eps)                                  # (Cout,)
    w_folded = conv_w[:, :, 0, 0] * scale[:, None]                             # (Cout, Cin)
    b_folded = (conv_b - bn_mean) * scale + bn_beta                            # (Cout,)

    # Block-diagonal weight / tiled bias so ipc images ride in one grid step as extra sublanes
    # ("widen the MXU work per push" instead of many tiny K=Cin pushes).
    w_blk = jnp.kron(jnp.eye(ipc, dtype=w_folded.dtype), w_folded).astype(compute_dtype)
    b_blk = jnp.tile(b_folded, ipc)[:, None].astype(jnp.float32)               # (ipc*Cout, 1)

    x_flat = x_nchw.reshape(N // ipc, ipc * Cin, H * W).astype(compute_dtype)  # free reshape
    pool_mat = jnp.asarray(_pool_matrix(H, W, Ho, Wo))                         # constant under jit

    out = pl.pallas_call(
        _transition_kernel,
        out_shape=jax.ShapeDtypeStruct((N // ipc, ipc * Cout, Ho * Wo), x_nchw.dtype),
        grid_spec=pltpu.PrefetchScalarGridSpec(
            num_scalar_prefetch=0,
            grid=(N // ipc,),
            in_specs=[
                pl.BlockSpec((1, ipc * Cin, H * W), lambda n: (n, 0, 0)),
                pl.BlockSpec((ipc * Cout, ipc * Cin), lambda n: (0, 0)),   # grid-invariant
                pl.BlockSpec((ipc * Cout, 1), lambda n: (0, 0)),           # grid-invariant
                pl.BlockSpec((H * W, Ho * Wo), lambda n: (0, 0)),          # grid-invariant
            ],
            out_specs=pl.BlockSpec((1, ipc * Cout, Ho * Wo), lambda n: (n, 0, 0)),
        ),
        compiler_params=pltpu.CompilerParams(dimension_semantics=("parallel",)),
    )(x_flat, w_blk, b_blk, pool_mat)

    return out.reshape(N, Cout, Ho, Wo)                                        # free reshape


def _reference(x, conv_w, conv_b, g, b, m, v, eps=1e-5):
    """Pure numpy (float64) reference: conv1x1 -> BN(eval) -> ReLU -> avgpool 2x2 ceil_mode."""
    x = np.asarray(x, np.float64)
    wmat = np.asarray(conv_w, np.float64)[:, :, 0, 0]
    cb = np.asarray(conv_b, np.float64)
    g, b, m, v = (np.asarray(t, np.float64) for t in (g, b, m, v))

    y = np.einsum("nchw,oc->nohw", x, wmat) + cb[None, :, None, None]
    y = (y - m[None, :, None, None]) / np.sqrt(v[None, :, None, None] + eps)
    y = y * g[None, :, None, None] + b[None, :, None, None]
    y = np.maximum(y, 0.0)

    N, C, H, W = y.shape
    Ho, Wo = -(-H // 2), -(-W // 2)
    out = np.zeros((N, C, Ho, Wo), dtype=np.float64)
    for ho in range(Ho):
        for wo in range(Wo):
            hs, ws = 2 * ho, 2 * wo
            he, we = min(hs + 2, H), min(ws + 2, W)
            out[:, :, ho, wo] = y[:, :, hs:he, ws:we].mean(axis=(2, 3))  # clipped-window divisor
    return out


if __name__ == "__main__":
    def make_inputs(key, N, Cin, Cout, H, W):
        ks = jax.random.split(key, 7)
        x = jax.random.normal(ks[0], (N, Cin, H, W), dtype=jnp.float32)
        conv_w = jax.random.normal(ks[1], (Cout, Cin, 1, 1), dtype=jnp.float32) * 0.1
        conv_b = jax.random.normal(ks[2], (Cout,), dtype=jnp.float32) * 0.1
        bn_gamma = 1.0 + 0.1 * jax.random.normal(ks[3], (Cout,), dtype=jnp.float32)
        bn_beta = 0.1 * jax.random.normal(ks[4], (Cout,), dtype=jnp.float32)
        bn_mean = 0.1 * jax.random.normal(ks[5], (Cout,), dtype=jnp.float32)
        bn_var = jnp.abs(0.5 + 0.1 * jax.random.normal(ks[6], (Cout,), dtype=jnp.float32))
        return x, conv_w, conv_b, bn_gamma, bn_beta, bn_mean, bn_var

    fwd = jax.jit(transition_forward, static_argnames=("images_per_step", "compute_dtype"))

    key = jax.random.PRNGKey(0)
    cases = [
        # (N, Cin, Cout, H,  W,  ipc, compute_dtype, rtol, atol)
        (2, 4, 8, 16, 16, 1, jnp.float32, 1e-4, 1e-5),   # per-image grid (v7x: 2 parallel steps)
        (2, 4, 8, 16, 16, 2, jnp.float32, 1e-4, 1e-5),   # whole batch in one step (v5e/v6e)
        (2, 4, 8, 7, 9, 1, jnp.float32, 1e-4, 1e-5),     # odd H/W -> ceil_mode clipped windows
        (2, 4, 8, 16, 16, 2, jnp.bfloat16, 5e-2, 5e-2),  # bf16 inputs, f32 accumulation
    ]
    for (N, Cin, Cout, H, W, ipc, cdt, rtol, atol) in cases:
        key, sub = jax.random.split(key)
        args = make_inputs(sub, N, Cin, Cout, H, W)
        out = fwd(*args, images_per_step=ipc, compute_dtype=cdt)
        out = jax.block_until_ready(out)
        ref = _reference(*args)
        Ho, Wo = -(-H // 2), -(-W // 2)
        assert out.shape == (N, Cout, Ho, Wo)
        np.testing.assert_allclose(np.asarray(out, np.float64), ref, rtol=rtol, atol=atol)

    print("KERNEL_OK")
</pallas_src>

<mosaic_0001>
module attributes {stable_mosaic.version = 11 : i64} {
  func.func @_transition_kernel(%arg0: i32, %arg1: memref<1x4x256xf32, #tpu.memory_space<vmem>>, %arg2: memref<8x4xf32, #tpu.memory_space<vmem>>, %arg3: memref<8x1xf32, #tpu.memory_space<vmem>>, %arg4: memref<256x64xf32, #tpu.memory_space<vmem>>, %arg5: memref<1x8x64xf32, #tpu.memory_space<vmem>>) attributes {dimension_semantics = [#tpu.dimension_semantics<parallel>], iteration_bounds = array<i64: 2>, scalar_prefetch = 0 : i64, scratch_operands = 0 : i64, tpu.core_type = #tpu.core_type<tc>, window_params = [{transform_indices = @transform_0, window_bounds = array<i64: 1, 4, 256>}, {pipeline_mode = #tpu.pipeline_mode<synchronous>, transform_indices = @transform_1, window_bounds = array<i64: 8, 4>}, {pipeline_mode = #tpu.pipeline_mode<synchronous>, transform_indices = @transform_2, window_bounds = array<i64: 8, 1>}, {pipeline_mode = #tpu.pipeline_mode<synchronous>, transform_indices = @transform_3, window_bounds = array<i64: 256, 64>}, {transform_indices = @transform_4, window_bounds = array<i64: 1, 8, 64>}]} {
    %c0 = arith.constant 0 : index
    %c0_0 = arith.constant 0 : index
    %0 = vector.load %arg2[%c0, %c0_0] : memref<8x4xf32, #tpu.memory_space<vmem>>, vector<8x4xf32>
    %c0_1 = arith.constant 0 : index
    %c0_2 = arith.constant 0 : index
    %c0_3 = arith.constant 0 : index
    %1 = vector.load %arg1[%c0_1, %c0_2, %c0_3] : memref<1x4x256xf32, #tpu.memory_space<vmem>>, vector<1x4x256xf32>
    %2 = vector.shape_cast %1 : vector<1x4x256xf32> to vector<4x256xf32>
    %cst = arith.constant dense<0.000000e+00> : vector<8x256xf32>
    %3 = tpu.matmul %0, %2, %cst {dimension_numbers = #tpu.dot_dimension_numbers<[1], [0], [0], [1], [0, 0, 1, 1], [], []>} : vector<8x4xf32>, vector<4x256xf32>, vector<8x256xf32> -> vector<8x256xf32>
    %c0_4 = arith.constant 0 : index
    %c0_5 = arith.constant 0 : index
    %4 = vector.load %arg3[%c0_4, %c0_5] : memref<8x1xf32, #tpu.memory_space<vmem>>, vector<8x1xf32>
    %5 = vector.broadcast %4 : vector<8x1xf32> to vector<8x256xf32>
    %6 = arith.addf %3, %5 : vector<8x256xf32>
    %cst_6 = arith.constant 0.000000e+00 : f32
    %7 = vector.broadcast %cst_6 : f32 to vector<8x256xf32>
    %8 = arith.maximumf %6, %7 : vector<8x256xf32>
    %c0_7 = arith.constant 0 : index
    %c0_8 = arith.constant 0 : index
    %9 = vector.load %arg4[%c0_7, %c0_8] : memref<256x64xf32, #tpu.memory_space<vmem>>, vector<256x64xf32>
    %cst_9 = arith.constant dense<0.000000e+00> : vector<8x64xf32>
    %10 = tpu.matmul %8, %9, %cst_9 {dimension_numbers = #tpu.dot_dimension_numbers<[1], [0], [0], [1], [0, 0, 1, 1], [], []>} : vector<8x256xf32>, vector<256x64xf32>, vector<8x64xf32> -> vector<8x64xf32>
    %c0_10 = arith.constant 0 : index
    %c0_11 = arith.constant 0 : index
    %c0_12 = arith.constant 0 : index
    %11 = vector.load %arg5[%c0_10, %c0_11, %c0_12] : memref<1x8x64xf32, #tpu.memory_space<vmem>>, vector<1x8x64xf32>
    %12 = vector.shape_cast %11 : vector<1x8x64xf32> to vector<8x64xf32>
    %13 = vector.shape_cast %10 : vector<8x64xf32> to vector<1x8x64xf32>
    tpu.vector_store %arg5[%c0_10, %c0_11, %c0_12], %13 {strides = array<i32>} : memref<1x8x64xf32, #tpu.memory_space<vmem>>, vector<1x8x64xf32>,
    return
  }
  func.func @transform_0(%arg0: i32) -> (i32, i32, i32) {
    %c0_i32 = arith.constant 0 : i32
    %c0_i32_0 = arith.constant 0 : i32
    %c0_i32_1 = arith.constant 0 : i32
    return %arg0, %c0_i32, %c0_i32_0 : i32, i32, i32
  }
  func.func @transform_1(%arg0: i32) -> (i32, i32) {
    %c0_i32 = arith.constant 0 : i32
    %c0_i32_0 = arith.constant 0 : i32
    %c0_i32_1 = arith.constant 0 : i32
    return %c0_i32, %c0_i32_0 : i32, i32
  }
  func.func @transform_2(%arg0: i32) -> (i32, i32) {
    %c0_i32 = arith.constant 0 : i32
    %c0_i32_0 = arith.constant 0 : i32
    %c0_i32_1 = arith.constant 0 : i32
    return %c0_i32, %c0_i32_0 : i32, i32
  }
  func.func @transform_3(%arg0: i32) -> (i32, i32) {
    %c0_i32 = arith.constant 0 : i32
    %c0_i32_0 = arith.constant 0 : i32
    %c0_i32_1 = arith.constant 0 : i32
    return %c0_i32, %c0_i32_0 : i32, i32
  }
  func.func @transform_4(%arg0: i32) -> (i32, i32, i32) {
    %c0_i32 = arith.constant 0 : i32
    %c0_i32_0 = arith.constant 0 : i32
    %c0_i32_1 = arith.constant 0 : i32
    return %arg0, %c0_i32, %c0_i32_0 : i32, i32, i32
  }
}

</mosaic_0001>

<bundles_post_ra>
// kernel: transition_forward.1
= control target key start
LH: loop header
LB: loop body
LE: loop exit
PB: predicated region body
PF: predicated region fallthrough
CT: control target
= control target key end

     0   :  { %9 = vsyncpa [#allocation3], 0  ;;  %s650_s15 = smov 0   ;;  %s721_s0 = inlined_call_operand.vmem [shape: f32[2,4,256], index: 0, kind: input, shape index: {}]   ;;  %s722_s1 = inlined_call_operand.vmem [shape: f32[8,4], index: 1, kind: input, shape index: {}]   ;;  %s723_s2 = inlined_call_operand.vmem [shape: f32[8,1], index: 2, kind: input, shape index: {}]   ;;  %s724_s3 = inlined_call_operand.hbm [shape: f32[256,64], index: 3, kind: input, shape index: {}]   ;;  %s725_s4 = inlined_call_operand.vmem [shape: f32[2,8,64], index: 4, kind: output, shape index: {}]  }
   0x1 LB: > { %s656_s16 = sadd.s32 4294967295, %s618_s15   ;;  %p474_p0 = scmp.ge.s32.totalorder %s618_s15, 1  ;;  %s618_s15 = sphi %s650_s15, %s15_s15  }
   0x2   : > { %p135_p1 = scmp.lt.s32.totalorder %s618_s15, 3  ;;  %s620_s17 = smov [#allocation2]  }
   0x3   : > { %s153_s18 = sshll.u32 %s620_s17, 4  ;;  %p726_p3 = scmp.eq.s32.totalorder %s656_s16, 0  ;;  %s154_s18 = int_to_ptr.vmem [resolvable:$true] %s153_s18 }
   0x4   : > { %p660_p2 = pnand %p474_p0, %p135_p1  ;;  %s580_s23 = scalar_lea.hbm %s724_s3, 4096 }
   0x5   : > { %p581_p6 = scmp.ne.s32.totalorder %s724_s3, %s580_s23  ;;  %p587_p10 = scmp.lt.u32.totalorder %s580_s23, %s724_s3 }
   0x6   : > { %s728_s19 = scalar_select %p660_p2, 1, 0 }
   0x7   : > { %p559_p4 = pneg %p660_p2 }
   0x9   : > { %p669_p5 = pnand %p726_p3, %p559_p4 }
   0xb   : > { %p582_p7 = pneg %p669_p5 }
   0xd   : > { %p583_p8 = pnand %p582_p7, %p581_p6 }
   0xf   : > { %p584_p9 = pneg %p583_p8 }
  0x11   : > { %p589_p11 = pnand %p587_p10, %p584_p9 }
  0x13   : > { %592 = shalt.err (!%p589_p11)
}
  0x14   : > { %s593_s28 = scalar_lea.vmem %s154_s18, 4096  ;;  %p601_p1 = scmp.lt.s32.totalorder %s154_s18, %s154_s18 }
  0x15   : > { %p594_p12 = scmp.ne.s32.totalorder %s154_s18, %s593_s28  ;;  %p602_p4 = scmp.lt.s32.totalorder %s593_s28, %s593_s28 }
  0x17   : > { %p596_p13 = pnand %p594_p12, %p582_p7  ;;  %p603_p3 = por %p602_p4, %p601_p1 }
  0x19   : > { %p597_p0 = pneg %p596_p13 }
  0x1b   : > { %p604_p2 = pnand %p603_p3, %p597_p0 }
  0x1d   : > { %607 = shalt.err (!%p604_p2)
}
  0x1e   : > { %s621_s29 = smov 128   ;;  %s622_s30 = smov 8  }
  0x1f   : > { %562 = dma.hbm_to_vmem [thread:$0]  (!%p669_p5), %s724_s3, 4096, %s154_s18, [#allocation3], %s621_s29, %s621_s29, %s622_s30  }
  0x20   : > { %p730_p6 = scmp.ne.s32.totalorder %s728_s19, 0 }
  0x21   : > { %p731_p8 = scmp.eq.s32.totalorder (!%p730_p6), %s656_s16, 0 }
  0x22   : > { %177 = sbr.rel (%p730_p6) target bundleno = 486 (0x1e6), region = 36 }
  0x29   : > { %613 = dma.done.wait (%p731_p8), [#allocation3], 4096   ;;  %p732_p7 = pmov %p731_p8 }
  0x2a   : > { %p202_p2 = scmp.lt.s32.totalorder %s656_s16, 1  ;;  %v623_v0 = vmov 0.0   ;;  %v624_v1 = vmov 0   ;;  %vm225_vm0 = vcmask 1043456   ;;  %v211_v3 = vld [vmem:[%s722_s1] sm:$0xff]  ;;  %v320_v7 = vld [vmem:[#allocation2 + $0x88] sm:$0xff] }
  0x2b   : > { %615 = vsyncadd (%p732_p7), [#allocation3], 4294963200  ;;  %294 = vmatprep.mubr.f32.mxu0 %v623_v0  ;;  %578 = vset.pattern.permute.xlu0 %v624_v1  ;;  %v213_v4 = vld [vmem:[%s723_s2] sm:$0xff]  ;;  %vm221_vm1 = vcmask 31744   ;;  %v304_v10 = vld [vmem:[#allocation2 + $0x8] sm:$0xff]  ;;  %vm405_vm2 = vcmask 523264  }
  0x2c   : > { %s734_s16 = smov (!%p202_p2, %s656_s16), 1  ;;  %216 = vperm.xlu0 %578, %v213_v4   ;;  %v319_v6 = vld [vmem:[#allocation2 + $0x80] sm:$0xff]  ;;  %v321_v11 = vld [vmem:[#allocation2 + $0x90] sm:$0xff]  ;;  %v322_v12 = vld [vmem:[#allocation2 + $0x98] sm:$0xff] }
  0x2d   : > { %s487_s7 = sshll.u32 %s734_s16, 3  ;;  %v303_v8 = vld [vmem:[#allocation2] sm:$0xff]  ;;  %v523_v9 = vpack.c.bf16 %v320_v7, %v319_v6  ;;  %v527_v14 = vpack.c.bf16 %v322_v12, %v321_v11  ;;  %v305_v15 = vld [vmem:[#allocation2 + $0x10] sm:$0xff]  ;;  %v306_v16 = vld [vmem:[#allocation2 + $0x18] sm:$0xff] }
  0x2e   : > { %s206_s10 = scalar_lea.vmem %s721_s0, %s487_s7  ;;  %v525_v13 = vpack.c.bf16 %v304_v10, %v303_v8  ;;  %v323_v17 = vld [vmem:[#allocation2 + $0xa0] sm:$0xff]  ;;  %v324_v18 = vld [vmem:[#allocation2 + $0xa8] sm:$0xff]  ;;  %v529_v19 = vpack.c.bf16 %v306_v16, %v305_v15  ;;  %v325_v23 = vld [vmem:[#allocation2 + $0xb0] sm:$0xff]  ;;  %s210_s19 = scalar_lea.vmem %s725_s4, %s487_s7 }
  0x2f   : > { %v212_v2 = vld [vmem:[%s206_s10] sm:$0xff]  ;;  %524 = vmatprep.subr.bf16.mxu1 %v523_v9  ;;  %v531_v20 = vpack.c.bf16 %v324_v18, %v323_v17  ;;  %v308_v22 = vld [vmem:[#allocation2 + $0x28] sm:$0xff]  ;;  %v326_v24 = vld [vmem:[#allocation2 + $0xb8] sm:$0xff] }
  0x30   : > { %v220_v5 = vcombine.high %v212_v2, %v212_v2  ;;  %526 = vmatpush3.bf16.msra.mxu1 %v525_v13  ;;  %v307_v21 = vld [vmem:[#allocation2 + $0x20] sm:$0xff]  ;;  %v535_v26 = vpack.c.bf16 %v326_v24, %v325_v23  ;;  %v309_v27 = vld [vmem:[#allocation2 + $0x30] sm:$0xff]  ;;  %v310_v28 = vld [vmem:[#allocation2 + $0x38] sm:$0xff] }
  0x31   : > { %528 = vmatprep.subr.bf16.mxu1 %v527_v14  ;;  %v533_v25 = vpack.c.bf16 %v308_v22, %v307_v21  ;;  %v327_v29 = vld [vmem:[#allocation2 + $0xc0] sm:$0xff]  ;;  %v328_v30 = vld [vmem:[#allocation2 + $0xc8] sm:$0xff]  ;;  %v537_v31 = vpack.c.bf16 %v310_v28, %v309_v27  ;;  %v329_v35 = vld [vmem:[#allocation2 + $0xd0] sm:$0xff] }
  0x32   : > { %482 = vmatprep.subr.msk.mxu0 %vm225_vm0, %v220_v5  ;;  %v539_v32 = vpack.c.bf16 %v328_v30, %v327_v29  ;;  %v311_v33 = vld [vmem:[#allocation2 + $0x40] sm:$0xff]  ;;  %v312_v34 = vld [vmem:[#allocation2 + $0x48] sm:$0xff]  ;;  %v330_v36 = vld [vmem:[#allocation2 + $0xd8] sm:$0xff] }
  0x33   : > { %483 = vmatpush1.msk.msra.mxu0 %vm225_vm0, %v212_v2  ;;  %v541_v37 = vpack.c.bf16 %v312_v34, %v311_v33  ;;  %v543_v38 = vpack.c.bf16 %v330_v36, %v329_v35  ;;  %v313_v39 = vld [vmem:[#allocation2 + $0x50] sm:$0xff]  ;;  %v314_v40 = vld [vmem:[#allocation2 + $0x58] sm:$0xff]  ;;  %v331_v41 = vld [vmem:[#allocation2 + $0xe0] sm:$0xff] }
  0x34   : > { %484 = vmatmul.mubr.msk.f32.vlgmr.msra.gmra.mrb[0].mxu0 %vm221_vm1, %v211_v3  ;;  %530 = vmatpush3.bf16.msra.mxu1 %v529_v19  ;;  %v332_v42 = vld [vmem:[#allocation2 + $0xe8] sm:$0xff]  ;;  %v545_v43 = vpack.c.bf16 %v314_v40, %v313_v39  ;;  %v315_v45 = vld [vmem:[#allocation2 + $0x60] sm:$0xff]  ;;  %v333_v48 = vld [vmem:[#allocation2 + $0xf0] sm:$0xff] }
  0x35   : > { %532 = vmatprep.subr.bf16.mxu1 %v531_v20  ;;  %v547_v44 = vpack.c.bf16 %v332_v42, %v331_v41  ;;  %v316_v46 = vld [vmem:[#allocation2 + $0x68] sm:$0xff]  ;;  %v334_v49 = vld [vmem:[#allocation2 + $0xf8] sm:$0xff]  ;;  %v317_v51 = vld [vmem:[#allocation2 + $0x70] sm:$0xff] }
  0x36   : > { %v549_v47 = vpack.c.bf16 %v316_v46, %v315_v45  ;;  %v551_v50 = vpack.c.bf16 %v334_v49, %v333_v48  ;;  %v318_v52 = vld [vmem:[#allocation2 + $0x78] sm:$0xff] }
  0x37   : > { %v553_v53 = vpack.c.bf16 %v318_v52, %v317_v51 }
  0x38   : > { %534 = vmatpush3.bf16.msra.mxu1 %v533_v25 }
  0x39   : > { %536 = vmatprep.subr.bf16.mxu1 %v535_v26 }
  0x3c   : > { %538 = vmatpush3.bf16.msra.mxu1 %v537_v31 }
  0x3d   : > { %540 = vmatprep.subr.bf16.mxu1 %v539_v32 }
  0x40   : > { %542 = vmatpush3.bf16.msra.mxu1 %v541_v37 }
  0x41   : > { %544 = vmatprep.subr.bf16.mxu1 %v543_v38 }
  0x44   : > { %546 = vmatpush3.bf16.msra.mxu1 %v545_v43 }
  0x45   : > { %548 = vmatprep.subr.bf16.mxu1 %v547_v44 }
  0x48   : > { %550 = vmatpush3.bf16.msra.mxu1 %v549_v47 }
  0x49   : > { %552 = vmatprep.subr.bf16.mxu1 %v551_v50 }
  0x4c   : > { %554 = vmatpush3.bf16.msra.mxu1 %v553_v53 }
  0xab   : > { %v217_v54 = vpop.permute.xlu0 %216 }
 0x107   : > { %v296_v55 = vpop.f32.mrb[0].mxu0 }
 0x108   : > { %v297_v56 = vadd.f32 %v296_v55, %v217_v54  ;;  %v298_v57 = vpop.f32.mrb[1].mxu0 }
 0x109   : > { %v299_v58 = vadd.f32 %v298_v57, %v217_v54 }
 0x10a   : > { %v301_v60 = vmax.f32 %v297_v56, 0.0 }
 0x10b   : > { %v302_v59 = vmax.f32 %v299_v58, 0.0 }
 0x10d   : > { %399 = vmatprep.mubr.f32.mxu1 %v302_v59 }
 0x10e   : > { %400 = vmatmul.mubr.f32.vlgmr.msra.gmra.mrb[0].mxu1 %v301_v60 }
 0x1e1   : > { %v520_v61 = vpop.f32.mrb[0].mxu1 }
 0x1e2   : > { %v521_v62 = vpop.f32.mrb[1].mxu1 }
 0x1e3   : > { %v522_v63 = vadd.f32 %v521_v62, %v520_v61 }
 0x1e5   : > { %406 = vst.msk [vmem:[%s210_s19] sm:$0xff] %vm405_vm2, %v522_v63 }
 0x1e6 PF: > { %s15_s15 = sadd.s32 1, %s618_s15  }
 0x1e7   : > { %p12_p3 = scmp.ge.s32.totalorder %s15_s15, 4  }
 0x1e9   :  { %14 = sbr.rel (!%p12_p3) target bundleno = 1 (0x1), region = 71 }
 0x1f0   :  { %426 = vsyncpa [#allocation3], 1 }
 0x1f1   :  { %428 = vsyncpa [#allocation3 + $0x1], 1 }

</bundles_post_ra>
